<compile_context>
chip_gen: v6e
topology: v6e:2x2x1
jax: 0.10.0
libtpu: 0.0.40
codegen_flags: <defaults>
</compile_context>

<pallas_src>
import functools

import numpy as np
import jax
import jax.numpy as jnp
from jax.experimental import pallas as pl
from jax.experimental.pallas import tpu as pltpu


COMPUTE_DTYPE = jnp.bfloat16          # MXU operand dtype; accumulation stays f32
LN_EPS = 1e-5                         # nn.LayerNorm default
VMEM_LIMIT = 32 * 1024 * 1024         # explicit scoped-VMEM budget (re-derive for v7x at scale)


# ----------------------------------------------------------------------------
# Helpers
# ----------------------------------------------------------------------------
def _round_up(n, m):
    return ((n + m - 1) // m) * m


def _pick_q_tile(sq, max_tile=256):
    """Largest q-row tile <= max_tile that divides sq and is a multiple of 8 (else sq)."""
    if sq <= max_tile:
        return sq
    t = (max_tile // 8) * 8
    while t >= 8:
        if sq % t == 0:
            return t
        t -= 8
    return sq


# ----------------------------------------------------------------------------
# Fused attention core (shared by self- and cross-attention kernels)
# ----------------------------------------------------------------------------
def _attention_core(xq, kv, mask, w, b, g, beta, *, num_heads, scale, eps, out_dtype):
    """Multi-head attention + dense + residual add + LayerNorm on one q row tile.

    xq  : (Tq, D)  f32  query rows (also the residual)
    kv  : (Sk, D)  f32  key/value rows (same tensor as the queries for self-attention)
    mask: (Tq, Sk) f32  applied as `scores + mask * (-1e-09)` (as in the reference)
    w   : (D, D)   f32  attention output projection ("dense")
    """
    tq, d_model = xq.shape
    depth = d_model // num_heads

    mask_bias = mask * (-1e-09)
    # Fold 1/sqrt(depth) into q once (one (Tq,D) mul instead of H x (Tq,Sk) muls).
    q_bf = (xq * scale).astype(COMPUTE_DTYPE)
    kv_bf = kv.astype(COMPUTE_DTYPE)
    w_bf = w.astype(COMPUTE_DTYPE)

    # Accumulate each head's contribution to the dense projection directly:
    # concat(head_outs) @ W == sum_h head_out_h @ W[h*dp:(h+1)*dp]  -> no concat copy.
    proj = jnp.zeros((tq, d_model), jnp.float32)
    for h in range(num_heads):                      # static unroll over heads
        lo = h * depth
        qh = q_bf[:, lo:lo + depth]                 # (Tq, dp)
        kh = kv_bf[:, lo:lo + depth]                # (Sk, dp)
        vh = kv_bf[:, lo:lo + depth]                # (Sk, dp)
        # contraction on depth without materializing k.T
        s = jax.lax.dot_general(qh, kh, (((1,), (1,)), ((), ())),
                                preferred_element_type=jnp.float32)          # (Tq, Sk)
        s = s + mask_bias
        m = jnp.max(s, axis=-1, keepdims=True)
        p = jnp.exp(s - m)
        attn = p / jnp.sum(p, axis=-1, keepdims=True)   # exact division (correctness fix)
        head_out = jnp.dot(attn.astype(COMPUTE_DTYPE), vh,
                           preferred_element_type=jnp.float32)               # (Tq, dp)
        proj = proj + jnp.dot(head_out.astype(COMPUTE_DTYPE), w_bf[lo:lo + depth, :],
                              preferred_element_type=jnp.float32)            # (Tq, D)

    # dense bias + residual (dropout = identity in eval) + LayerNorm, all fused
    y = proj + b + xq
    mu = jnp.mean(y, axis=-1, keepdims=True)
    var = jnp.mean((y - mu) ** 2, axis=-1, keepdims=True)
    yn = (y - mu) * jax.lax.rsqrt(var + eps)
    return (yn * g + beta).astype(out_dtype)


def _self_attn_ln_kernel(x_ref, mask_ref, w_ref, b_ref, g_ref, beta_ref, o_ref,
                         *, num_heads, scale, eps, tile_q):
    # x_ref holds the full (S, D) sequence for this batch element: it is DMAed ONCE and
    # serves as q, k, v AND the residual (the q tile is just a VMEM slice of it).
    qi = pl.program_id(1)
    row0 = pl.multiple_of(qi * tile_q, tile_q)
    x_full = x_ref[...]                                 # (S, D)
    xq = x_ref[pl.ds(row0, tile_q), :]                  # (tile_q, D) q rows / residual
    o_ref[...] = _attention_core(
        xq, x_full, mask_ref[...], w_ref[...], b_ref[...], g_ref[...], beta_ref[...],
        num_heads=num_heads, scale=scale, eps=eps, out_dtype=o_ref.dtype)


def _cross_attn_ln_kernel(xq_ref, kv_ref, mask_ref, w_ref, b_ref, g_ref, beta_ref, o_ref,
                          *, num_heads, scale, eps):
    o_ref[...] = _attention_core(
        xq_ref[...], kv_ref[...], mask_ref[...], w_ref[...], b_ref[...], g_ref[...],
        beta_ref[...], num_heads=num_heads, scale=scale, eps=eps, out_dtype=o_ref.dtype)


def _ffn_ln_kernel(x_ref, w1_ref, b1_ref, w2_ref, b2_ref, g_ref, beta_ref, o_ref, *, eps):
    """Fused FFN (linear -> relu -> linear) + residual add + LayerNorm, per row tile."""
    x = x_ref[...]                                                         # (tile_m, D) f32
    h = jnp.dot(x.astype(COMPUTE_DTYPE), w1_ref[...].astype(COMPUTE_DTYPE),
                preferred_element_type=jnp.float32) + b1_ref[...]
    h = jnp.maximum(h, 0.0)                                                # ReLU (dropout = id)
    y = jnp.dot(h.astype(COMPUTE_DTYPE), w2_ref[...].astype(COMPUTE_DTYPE),
                preferred_element_type=jnp.float32) + b2_ref[...]
    z = y + x                                                              # residual add
    mu = jnp.mean(z, axis=-1, keepdims=True)
    var = jnp.mean((z - mu) ** 2, axis=-1, keepdims=True)
    zn = (z - mu) * jax.lax.rsqrt(var + eps)
    o_ref[...] = (zn * g_ref[...] + beta_ref[...]).astype(o_ref.dtype)


# ----------------------------------------------------------------------------
# Pallas wrappers
# ----------------------------------------------------------------------------
def fused_self_attn_ln(x, mask, w, b, g, beta, num_heads, eps=LN_EPS):
    B, S, D = x.shape
    depth = D // num_heads
    scale = 1.0 / float(np.sqrt(depth))
    tile_q = _pick_q_tile(S)
    n_q = S // tile_q

    kernel = functools.partial(_self_attn_ln_kernel, num_heads=num_heads,
                               scale=scale, eps=eps, tile_q=tile_q)
    return pl.pallas_call(
        kernel,
        out_shape=jax.ShapeDtypeStruct((B, S, D), jnp.float32),
        grid=(B, n_q),
        in_specs=[
            pl.BlockSpec((None, S, D), lambda bi, qi: (bi, 0, 0)),   # x: single DMA per batch
            pl.BlockSpec((tile_q, S), lambda bi, qi: (qi, 0)),       # mask rows for this q tile
            pl.BlockSpec((D, D), lambda bi, qi: (0, 0)),             # dense weight: resident
            pl.BlockSpec((1, D), lambda bi, qi: (0, 0)),             # dense bias
            pl.BlockSpec((1, D), lambda bi, qi: (0, 0)),             # LN gamma
            pl.BlockSpec((1, D), lambda bi, qi: (0, 0)),             # LN beta
        ],
        out_specs=pl.BlockSpec((None, tile_q, D), lambda bi, qi: (bi, qi, 0)),
        compiler_params=pltpu.CompilerParams(
            dimension_semantics=("parallel", "parallel"),
            vmem_limit_bytes=VMEM_LIMIT),
    )(x, mask, w, b.reshape(1, D), g.reshape(1, D), beta.reshape(1, D))


def fused_cross_attn_ln(x, kv, mask, w, b, g, beta, num_heads, eps=LN_EPS):
    B, Sq, D = x.shape
    Sk = kv.shape[1]
    depth = D // num_heads
    scale = 1.0 / float(np.sqrt(depth))
    tile_q = _pick_q_tile(Sq)
    n_q = Sq // tile_q

    kernel = functools.partial(_cross_attn_ln_kernel, num_heads=num_heads,
                               scale=scale, eps=eps)
    return pl.pallas_call(
        kernel,
        out_shape=jax.ShapeDtypeStruct((B, Sq, D), jnp.float32),
        grid=(B, n_q),
        in_specs=[
            pl.BlockSpec((None, tile_q, D), lambda bi, qi: (bi, qi, 0)),  # q tile + residual
            pl.BlockSpec((None, Sk, D), lambda bi, qi: (bi, 0, 0)),       # enc: one DMA per batch
            pl.BlockSpec((tile_q, Sk), lambda bi, qi: (qi, 0)),           # mask rows
            pl.BlockSpec((D, D), lambda bi, qi: (0, 0)),                  # dense weight: resident
            pl.BlockSpec((1, D), lambda bi, qi: (0, 0)),                  # dense bias
            pl.BlockSpec((1, D), lambda bi, qi: (0, 0)),                  # LN gamma
            pl.BlockSpec((1, D), lambda bi, qi: (0, 0)),                  # LN beta
        ],
        out_specs=pl.BlockSpec((None, tile_q, D), lambda bi, qi: (bi, qi, 0)),
        compiler_params=pltpu.CompilerParams(
            dimension_semantics=("parallel", "parallel"),
            vmem_limit_bytes=VMEM_LIMIT),
    )(x, kv, mask, w, b.reshape(1, D), g.reshape(1, D), beta.reshape(1, D))


def fused_ffn_ln(x, w1, b1, w2, b2, g, beta, eps=LN_EPS, max_tile_m=256):
    B, S, D = x.shape
    F = w1.shape[1]
    M = B * S
    x2 = x.reshape(M, D)

    # Large row tiles amortize the ~0.35us/step overhead and feed the MXU's M dim;
    # rows are zero-padded to a tile multiple (LN of a zero row is eps-safe) and sliced back.
    tile_m = min(max_tile_m, _round_up(M, 8))
    m_pad = _round_up(M, tile_m)
    if m_pad != M:
        x2 = jnp.pad(x2, ((0, m_pad - M), (0, 0)))
    grid = (m_pad // tile_m,)

    out = pl.pallas_call(
        functools.partial(_ffn_ln_kernel, eps=eps),
        out_shape=jax.ShapeDtypeStruct((m_pad, D), jnp.float32),
        grid=grid,
        in_specs=[
            pl.BlockSpec((tile_m, D), lambda i: (i, 0)),          # activations (tiled rows)
            pl.BlockSpec((D, F), lambda i: (0, 0)),               # w1: resident
            pl.BlockSpec((1, F), lambda i: (0, 0)),               # b1
            pl.BlockSpec((F, D), lambda i: (0, 0)),               # w2: resident
            pl.BlockSpec((1, D), lambda i: (0, 0)),               # b2
            pl.BlockSpec((1, D), lambda i: (0, 0)),               # LN gamma
            pl.BlockSpec((1, D), lambda i: (0, 0)),               # LN beta
        ],
        out_specs=pl.BlockSpec((tile_m, D), lambda i: (i, 0)),
        compiler_params=pltpu.CompilerParams(
            dimension_semantics=("parallel",),
            vmem_limit_bytes=VMEM_LIMIT),
    )(x2, w1, b1.reshape(1, F), w2, b2.reshape(1, D), g.reshape(1, D), beta.reshape(1, D))
    return out[:M].reshape(B, S, D)


def decoder_layer_forward(params, x, enc_output, src_mask, tgt_mask, num_heads):
    # masked self-attention -> dense -> add & norm (one fused kernel)
    x = fused_self_attn_ln(
        x, tgt_mask,
        params["dense1_w"], params["dense1_b"], params["ln1_g"], params["ln1_b"], num_heads)
    # encoder-decoder attention -> dense -> add & norm (one fused kernel)
    x = fused_cross_attn_ln(
        x, enc_output, src_mask,
        params["dense2_w"], params["dense2_b"], params["ln2_g"], params["ln2_b"], num_heads)
    # feed-forward -> add & norm (one fused kernel, row-tiled)
    x = fused_ffn_ln(
        x, params["ffn_w1"], params["ffn_b1"], params["ffn_w2"], params["ffn_b2"],
        params["ln3_g"], params["ln3_b"])
    return x


# ----------------------------------------------------------------------------
# Pure-JAX reference (same bf16 MXU-operand / f32-accumulation precision as the kernels)
# ----------------------------------------------------------------------------
def _ref_mha(q, k, v, mask, w, b, num_heads):
    B, Sq, D = q.shape
    Sk = k.shape[1]
    depth = D // num_heads
    scale = 1.0 / float(np.sqrt(depth))
    qh = (q * scale).reshape(B, Sq, num_heads, depth).transpose(0, 2, 1, 3).astype(COMPUTE_DTYPE)
    kh = k.reshape(B, Sk, num_heads, depth).transpose(0, 2, 1, 3).astype(COMPUTE_DTYPE)
    vh = v.reshape(B, Sk, num_heads, depth).transpose(0, 2, 1, 3).astype(COMPUTE_DTYPE)
    s = jnp.einsum("bhqd,bhkd->bhqk", qh, kh, preferred_element_type=jnp.float32)
    s = s + mask * (-1e-09)
    m = jnp.max(s, axis=-1, keepdims=True)
    p = jnp.exp(s - m)
    p = p / jnp.sum(p, axis=-1, keepdims=True)
    o = jnp.einsum("bhqk,bhkd->bhqd", p.astype(COMPUTE_DTYPE), vh,
                   preferred_element_type=jnp.float32)
    o = o.transpose(0, 2, 1, 3).reshape(B, Sq, D)
    return jnp.dot(o.astype(COMPUTE_DTYPE), w.astype(COMPUTE_DTYPE),
                   preferred_element_type=jnp.float32) + b


def _ref_ffn(x, w1, b1, w2, b2):
    h = jnp.dot(x.astype(COMPUTE_DTYPE), w1.astype(COMPUTE_DTYPE),
                preferred_element_type=jnp.float32) + b1
    h = jnp.maximum(h, 0.0)
    return jnp.dot(h.astype(COMPUTE_DTYPE), w2.astype(COMPUTE_DTYPE),
                   preferred_element_type=jnp.float32) + b2


def _ref_ln(x, g, b, eps=LN_EPS):
    mu = jnp.mean(x, axis=-1, keepdims=True)
    var = jnp.mean((x - mu) ** 2, axis=-1, keepdims=True)
    return (x - mu) * jax.lax.rsqrt(var + eps) * g + b


def decoder_layer_reference(params, x, enc_output, src_mask, tgt_mask, num_heads):
    a1 = _ref_mha(x, x, x, tgt_mask, params["dense1_w"], params["dense1_b"], num_heads)
    x = _ref_ln(a1 + x, params["ln1_g"], params["ln1_b"])
    a2 = _ref_mha(x, enc_output, enc_output, src_mask,
                  params["dense2_w"], params["dense2_b"], num_heads)
    x = _ref_ln(a2 + x, params["ln2_g"], params["ln2_b"])
    f = _ref_ffn(x, params["ffn_w1"], params["ffn_b1"], params["ffn_w2"], params["ffn_b2"])
    x = _ref_ln(f + x, params["ln3_g"], params["ln3_b"])
    return x


# ----------------------------------------------------------------------------
# Deterministic parameter init (PyTorch-Linear-style uniform bounds)
# ----------------------------------------------------------------------------
def init_params(key, d_model, d_ff):
    def lin(k, fan_in, fan_out):
        kw, kb = jax.random.split(k)
        bound = 1.0 / np.sqrt(fan_in)
        w = jax.random.uniform(kw, (fan_in, fan_out), jnp.float32, -bound, bound)
        b = jax.random.uniform(kb, (fan_out,), jnp.float32, -bound, bound)
        return w, b

    keys = jax.random.split(key, 4)
    d1w, d1b = lin(keys[0], d_model, d_model)
    d2w, d2b = lin(keys[1], d_model, d_model)
    f1w, f1b = lin(keys[2], d_model, d_ff)
    f2w, f2b = lin(keys[3], d_ff, d_model)
    return {
        "dense1_w": d1w, "dense1_b": d1b,
        "dense2_w": d2w, "dense2_b": d2b,
        "ffn_w1": f1w, "ffn_b1": f1b,
        "ffn_w2": f2w, "ffn_b2": f2b,
        "ln1_g": jnp.ones((d_model,), jnp.float32), "ln1_b": jnp.zeros((d_model,), jnp.float32),
        "ln2_g": jnp.ones((d_model,), jnp.float32), "ln2_b": jnp.zeros((d_model,), jnp.float32),
        "ln3_g": jnp.ones((d_model,), jnp.float32), "ln3_b": jnp.zeros((d_model,), jnp.float32),
    }


if __name__ == "__main__":
    # Small, lane-dense demo shapes: d_model a multiple of 128 keeps stores unmasked.
    B, S_DEC, S_ENC = 2, 16, 16
    D_MODEL, D_FF, NUM_HEADS = 128, 256, 4

    key = jax.random.PRNGKey(0)
    kx, ke, kp = jax.random.split(key, 3)
    x = jax.random.normal(kx, (B, S_DEC, D_MODEL), jnp.float32)
    enc_output = jax.random.normal(ke, (B, S_ENC, D_MODEL), jnp.float32)
    # causal target mask (1 above the diagonal), zero source mask
    tgt_mask = jnp.triu(jnp.ones((S_DEC, S_DEC), jnp.float32), k=1)
    src_mask = jnp.zeros((S_DEC, S_ENC), jnp.float32)

    params = init_params(kp, D_MODEL, D_FF)

    out = decoder_layer_forward(params, x, enc_output, src_mask, tgt_mask, NUM_HEADS)
    out = jax.block_until_ready(out)

    ref = decoder_layer_reference(params, x, enc_output, src_mask, tgt_mask, NUM_HEADS)
    # Kernel and reference use identical bf16-operand / f32-accumulation matmul precision,
    # so only summation-order differences remain -> comfortable tolerance.
    np.testing.assert_allclose(np.asarray(out), np.asarray(ref), rtol=5e-3, atol=5e-3)

    print("KERNEL_OK")
</pallas_src>

<mosaic_0001>
module attributes {stable_mosaic.version = 11 : i64} {
  func.func @_self_attn_ln_kernel(%arg0: i32, %arg1: i32, %arg2: memref<1x16x128xf32, #tpu.memory_space<vmem>>, %arg3: memref<16x16xf32, #tpu.memory_space<vmem>>, %arg4: memref<128x128xf32, #tpu.memory_space<vmem>>, %arg5: memref<1x128xf32, #tpu.memory_space<vmem>>, %arg6: memref<1x128xf32, #tpu.memory_space<vmem>>, %arg7: memref<1x128xf32, #tpu.memory_space<vmem>>, %arg8: memref<1x16x128xf32, #tpu.memory_space<vmem>>) attributes {dimension_semantics = [#tpu.dimension_semantics<parallel>, #tpu.dimension_semantics<parallel>], iteration_bounds = array<i64: 2, 1>, scalar_prefetch = 0 : i64, scratch_operands = 0 : i64, tpu.core_type = #tpu.core_type<tc>, window_params = [{transform_indices = @transform_0, window_bounds = array<i64: 1, 16, 128>}, {transform_indices = @transform_1, window_bounds = array<i64: 16, 16>}, {pipeline_mode = #tpu.pipeline_mode<synchronous>, transform_indices = @transform_2, window_bounds = array<i64: 128, 128>}, {pipeline_mode = #tpu.pipeline_mode<synchronous>, transform_indices = @transform_3, window_bounds = array<i64: 1, 128>}, {pipeline_mode = #tpu.pipeline_mode<synchronous>, transform_indices = @transform_4, window_bounds = array<i64: 1, 128>}, {pipeline_mode = #tpu.pipeline_mode<synchronous>, transform_indices = @transform_5, window_bounds = array<i64: 1, 128>}, {transform_indices = @transform_6, window_bounds = array<i64: 1, 16, 128>}]} {
    %c16_i32 = arith.constant 16 : i32
    %0 = arith.muli %arg1, %c16_i32 : i32
    %1 = tpu.assume_multiple %0, 16 : i32
    %c0 = arith.constant 0 : index
    %c0_0 = arith.constant 0 : index
    %c0_1 = arith.constant 0 : index
    %2 = vector.load %arg2[%c0, %c0_0, %c0_1] : memref<1x16x128xf32, #tpu.memory_space<vmem>>, vector<1x16x128xf32>
    %3 = vector.shape_cast %2 : vector<1x16x128xf32> to vector<16x128xf32>
    %c0_2 = arith.constant 0 : index
    %4 = arith.index_cast %1 : i32 to index
    %c0_3 = arith.constant 0 : index
    %5 = vector.load %arg2[%c0_2, %4, %c0_3] : memref<1x16x128xf32, #tpu.memory_space<vmem>>, vector<1x16x128xf32>
    %6 = vector.shape_cast %5 : vector<1x16x128xf32> to vector<16x128xf32>
    %c0_4 = arith.constant 0 : index
    %c0_5 = arith.constant 0 : index
    %7 = vector.load %arg3[%c0_4, %c0_5] : memref<16x16xf32, #tpu.memory_space<vmem>>, vector<16x16xf32>
    %c0_6 = arith.constant 0 : index
    %c0_7 = arith.constant 0 : index
    %8 = vector.load %arg4[%c0_6, %c0_7] : memref<128x128xf32, #tpu.memory_space<vmem>>, vector<128x128xf32>
    %c0_8 = arith.constant 0 : index
    %c0_9 = arith.constant 0 : index
    %9 = vector.load %arg5[%c0_8, %c0_9] : memref<1x128xf32, #tpu.memory_space<vmem>>, vector<1x128xf32>
    %c0_10 = arith.constant 0 : index
    %c0_11 = arith.constant 0 : index
    %10 = vector.load %arg6[%c0_10, %c0_11] : memref<1x128xf32, #tpu.memory_space<vmem>>, vector<1x128xf32>
    %c0_12 = arith.constant 0 : index
    %c0_13 = arith.constant 0 : index
    %11 = vector.load %arg7[%c0_12, %c0_13] : memref<1x128xf32, #tpu.memory_space<vmem>>, vector<1x128xf32>
    %cst = arith.constant -9.99999971E-10 : f32
    %12 = vector.broadcast %cst : f32 to vector<16x16xf32>
    %13 = arith.mulf %7, %12 : vector<16x16xf32>
    %cst_14 = arith.constant 0.176776692 : f32
    %14 = vector.broadcast %cst_14 : f32 to vector<16x128xf32>
    %15 = arith.mulf %6, %14 : vector<16x128xf32>
    %16 = arith.truncf %15 : vector<16x128xf32> to vector<16x128xbf16>
    %17 = arith.truncf %3 : vector<16x128xf32> to vector<16x128xbf16>
    %18 = arith.truncf %8 : vector<128x128xf32> to vector<128x128xbf16>
    %cst_15 = arith.constant 0.000000e+00 : f32
    %19 = vector.broadcast %cst_15 : f32 to vector<16x128xf32>
    %20 = vector.extract_strided_slice %16 {offsets = [0, 0], sizes = [16, 32], strides = [1, 1]} : vector<16x128xbf16> to vector<16x32xbf16>
    %21 = vector.extract_strided_slice %17 {offsets = [0, 0], sizes = [16, 32], strides = [1, 1]} : vector<16x128xbf16> to vector<16x32xbf16>
    %22 = vector.extract_strided_slice %17 {offsets = [0, 0], sizes = [16, 32], strides = [1, 1]} : vector<16x128xbf16> to vector<16x32xbf16>
    %cst_16 = arith.constant dense<0.000000e+00> : vector<16x16xf32>
    %23 = tpu.matmul %20, %21, %cst_16 {dimension_numbers = #tpu.dot_dimension_numbers<[1], [1], [0], [0], [0, 0, 1, 0], [], []>} : vector<16x32xbf16>, vector<16x32xbf16>, vector<16x16xf32> -> vector<16x16xf32>
    %24 = arith.addf %23, %13 : vector<16x16xf32>
    %cst_17 = arith.constant dense<0xFF800000> : vector<16xf32>
    %25 = vector.multi_reduction <maximumf>, %24, %cst_17 [1] : vector<16x16xf32> to vector<16xf32>
    %26 = vector.shape_cast %25 : vector<16xf32> to vector<16x1xf32>
    %27 = vector.broadcast %26 : vector<16x1xf32> to vector<16x16xf32>
    %28 = arith.subf %24, %27 : vector<16x16xf32>
    %29 = math.exp %28 : vector<16x16xf32>
    %cst_18 = arith.constant dense<0.000000e+00> : vector<16xf32>
    %30 = vector.multi_reduction <add>, %29, %cst_18 [1] : vector<16x16xf32> to vector<16xf32>
    %31 = vector.shape_cast %30 : vector<16xf32> to vector<16x1xf32>
    %32 = vector.broadcast %31 : vector<16x1xf32> to vector<16x16xf32>
    %33 = arith.divf %29, %32 : vector<16x16xf32>
    %34 = arith.truncf %33 : vector<16x16xf32> to vector<16x16xbf16>
    %cst_19 = arith.constant dense<0.000000e+00> : vector<16x32xf32>
    %35 = tpu.matmul %34, %22, %cst_19 {dimension_numbers = #tpu.dot_dimension_numbers<[1], [0], [0], [1], [0, 0, 1, 1], [], []>} : vector<16x16xbf16>, vector<16x32xbf16>, vector<16x32xf32> -> vector<16x32xf32>
    %36 = arith.truncf %35 : vector<16x32xf32> to vector<16x32xbf16>
    %37 = vector.extract_strided_slice %18 {offsets = [0, 0], sizes = [32, 128], strides = [1, 1]} : vector<128x128xbf16> to vector<32x128xbf16>
    %cst_20 = arith.constant dense<0.000000e+00> : vector<16x128xf32>
    %38 = tpu.matmul %36, %37, %cst_20 {dimension_numbers = #tpu.dot_dimension_numbers<[1], [0], [0], [1], [0, 0, 1, 1], [], []>} : vector<16x32xbf16>, vector<32x128xbf16>, vector<16x128xf32> -> vector<16x128xf32>
    %39 = arith.addf %19, %38 : vector<16x128xf32>
    %40 = vector.extract_strided_slice %16 {offsets = [0, 32], sizes = [16, 32], strides = [1, 1]} : vector<16x128xbf16> to vector<16x32xbf16>
    %41 = vector.extract_strided_slice %17 {offsets = [0, 32], sizes = [16, 32], strides = [1, 1]} : vector<16x128xbf16> to vector<16x32xbf16>
    %42 = vector.extract_strided_slice %17 {offsets = [0, 32], sizes = [16, 32], strides = [1, 1]} : vector<16x128xbf16> to vector<16x32xbf16>
    %cst_21 = arith.constant dense<0.000000e+00> : vector<16x16xf32>
    %43 = tpu.matmul %40, %41, %cst_21 {dimension_numbers = #tpu.dot_dimension_numbers<[1], [1], [0], [0], [0, 0, 1, 0], [], []>} : vector<16x32xbf16>, vector<16x32xbf16>, vector<16x16xf32> -> vector<16x16xf32>
    %44 = arith.addf %43, %13 : vector<16x16xf32>
    %cst_22 = arith.constant dense<0xFF800000> : vector<16xf32>
    %45 = vector.multi_reduction <maximumf>, %44, %cst_22 [1] : vector<16x16xf32> to vector<16xf32>
    %46 = vector.shape_cast %45 : vector<16xf32> to vector<16x1xf32>
    %47 = vector.broadcast %46 : vector<16x1xf32> to vector<16x16xf32>
    %48 = arith.subf %44, %47 : vector<16x16xf32>
    %49 = math.exp %48 : vector<16x16xf32>
    %cst_23 = arith.constant dense<0.000000e+00> : vector<16xf32>
    %50 = vector.multi_reduction <add>, %49, %cst_23 [1] : vector<16x16xf32> to vector<16xf32>
    %51 = vector.shape_cast %50 : vector<16xf32> to vector<16x1xf32>
    %52 = vector.broadcast %51 : vector<16x1xf32> to vector<16x16xf32>
    %53 = arith.divf %49, %52 : vector<16x16xf32>
    %54 = arith.truncf %53 : vector<16x16xf32> to vector<16x16xbf16>
    %cst_24 = arith.constant dense<0.000000e+00> : vector<16x32xf32>
    %55 = tpu.matmul %54, %42, %cst_24 {dimension_numbers = #tpu.dot_dimension_numbers<[1], [0], [0], [1], [0, 0, 1, 1], [], []>} : vector<16x16xbf16>, vector<16x32xbf16>, vector<16x32xf32> -> vector<16x32xf32>
    %56 = arith.truncf %55 : vector<16x32xf32> to vector<16x32xbf16>
    %57 = vector.extract_strided_slice %18 {offsets = [32, 0], sizes = [32, 128], strides = [1, 1]} : vector<128x128xbf16> to vector<32x128xbf16>
    %cst_25 = arith.constant dense<0.000000e+00> : vector<16x128xf32>
    %58 = tpu.matmul %56, %57, %cst_25 {dimension_numbers = #tpu.dot_dimension_numbers<[1], [0], [0], [1], [0, 0, 1, 1], [], []>} : vector<16x32xbf16>, vector<32x128xbf16>, vector<16x128xf32> -> vector<16x128xf32>
    %59 = arith.addf %39, %58 : vector<16x128xf32>
    %60 = vector.extract_strided_slice %16 {offsets = [0, 64], sizes = [16, 32], strides = [1, 1]} : vector<16x128xbf16> to vector<16x32xbf16>
    %61 = vector.extract_strided_slice %17 {offsets = [0, 64], sizes = [16, 32], strides = [1, 1]} : vector<16x128xbf16> to vector<16x32xbf16>
    %62 = vector.extract_strided_slice %17 {offsets = [0, 64], sizes = [16, 32], strides = [1, 1]} : vector<16x128xbf16> to vector<16x32xbf16>
    %cst_26 = arith.constant dense<0.000000e+00> : vector<16x16xf32>
    %63 = tpu.matmul %60, %61, %cst_26 {dimension_numbers = #tpu.dot_dimension_numbers<[1], [1], [0], [0], [0, 0, 1, 0], [], []>} : vector<16x32xbf16>, vector<16x32xbf16>, vector<16x16xf32> -> vector<16x16xf32>
    %64 = arith.addf %63, %13 : vector<16x16xf32>
    %cst_27 = arith.constant dense<0xFF800000> : vector<16xf32>
    %65 = vector.multi_reduction <maximumf>, %64, %cst_27 [1] : vector<16x16xf32> to vector<16xf32>
    %66 = vector.shape_cast %65 : vector<16xf32> to vector<16x1xf32>
    %67 = vector.broadcast %66 : vector<16x1xf32> to vector<16x16xf32>
    %68 = arith.subf %64, %67 : vector<16x16xf32>
    %69 = math.exp %68 : vector<16x16xf32>
    %cst_28 = arith.constant dense<0.000000e+00> : vector<16xf32>
    %70 = vector.multi_reduction <add>, %69, %cst_28 [1] : vector<16x16xf32> to vector<16xf32>
    %71 = vector.shape_cast %70 : vector<16xf32> to vector<16x1xf32>
    %72 = vector.broadcast %71 : vector<16x1xf32> to vector<16x16xf32>
    %73 = arith.divf %69, %72 : vector<16x16xf32>
    %74 = arith.truncf %73 : vector<16x16xf32> to vector<16x16xbf16>
    %cst_29 = arith.constant dense<0.000000e+00> : vector<16x32xf32>
    %75 = tpu.matmul %74, %62, %cst_29 {dimension_numbers = #tpu.dot_dimension_numbers<[1], [0], [0], [1], [0, 0, 1, 1], [], []>} : vector<16x16xbf16>, vector<16x32xbf16>, vector<16x32xf32> -> vector<16x32xf32>
    %76 = arith.truncf %75 : vector<16x32xf32> to vector<16x32xbf16>
    %77 = vector.extract_strided_slice %18 {offsets = [64, 0], sizes = [32, 128], strides = [1, 1]} : vector<128x128xbf16> to vector<32x128xbf16>
    %cst_30 = arith.constant dense<0.000000e+00> : vector<16x128xf32>
    %78 = tpu.matmul %76, %77, %cst_30 {dimension_numbers = #tpu.dot_dimension_numbers<[1], [0], [0], [1], [0, 0, 1, 1], [], []>} : vector<16x32xbf16>, vector<32x128xbf16>, vector<16x128xf32> -> vector<16x128xf32>
    %79 = arith.addf %59, %78 : vector<16x128xf32>
    %80 = vector.extract_strided_slice %16 {offsets = [0, 96], sizes = [16, 32], strides = [1, 1]} : vector<16x128xbf16> to vector<16x32xbf16>
    %81 = vector.extract_strided_slice %17 {offsets = [0, 96], sizes = [16, 32], strides = [1, 1]} : vector<16x128xbf16> to vector<16x32xbf16>
    %82 = vector.extract_strided_slice %17 {offsets = [0, 96], sizes = [16, 32], strides = [1, 1]} : vector<16x128xbf16> to vector<16x32xbf16>
    %cst_31 = arith.constant dense<0.000000e+00> : vector<16x16xf32>
    %83 = tpu.matmul %80, %81, %cst_31 {dimension_numbers = #tpu.dot_dimension_numbers<[1], [1], [0], [0], [0, 0, 1, 0], [], []>} : vector<16x32xbf16>, vector<16x32xbf16>, vector<16x16xf32> -> vector<16x16xf32>
    %84 = arith.addf %83, %13 : vector<16x16xf32>
    %cst_32 = arith.constant dense<0xFF800000> : vector<16xf32>
    %85 = vector.multi_reduction <maximumf>, %84, %cst_32 [1] : vector<16x16xf32> to vector<16xf32>
    %86 = vector.shape_cast %85 : vector<16xf32> to vector<16x1xf32>
    %87 = vector.broadcast %86 : vector<16x1xf32> to vector<16x16xf32>
    %88 = arith.subf %84, %87 : vector<16x16xf32>
    %89 = math.exp %88 : vector<16x16xf32>
    %cst_33 = arith.constant dense<0.000000e+00> : vector<16xf32>
    %90 = vector.multi_reduction <add>, %89, %cst_33 [1] : vector<16x16xf32> to vector<16xf32>
    %91 = vector.shape_cast %90 : vector<16xf32> to vector<16x1xf32>
    %92 = vector.broadcast %91 : vector<16x1xf32> to vector<16x16xf32>
    %93 = arith.divf %89, %92 : vector<16x16xf32>
    %94 = arith.truncf %93 : vector<16x16xf32> to vector<16x16xbf16>
    %cst_34 = arith.constant dense<0.000000e+00> : vector<16x32xf32>
    %95 = tpu.matmul %94, %82, %cst_34 {dimension_numbers = #tpu.dot_dimension_numbers<[1], [0], [0], [1], [0, 0, 1, 1], [], []>} : vector<16x16xbf16>, vector<16x32xbf16>, vector<16x32xf32> -> vector<16x32xf32>
    %96 = arith.truncf %95 : vector<16x32xf32> to vector<16x32xbf16>
    %97 = vector.extract_strided_slice %18 {offsets = [96, 0], sizes = [32, 128], strides = [1, 1]} : vector<128x128xbf16> to vector<32x128xbf16>
    %cst_35 = arith.constant dense<0.000000e+00> : vector<16x128xf32>
    %98 = tpu.matmul %96, %97, %cst_35 {dimension_numbers = #tpu.dot_dimension_numbers<[1], [0], [0], [1], [0, 0, 1, 1], [], []>} : vector<16x32xbf16>, vector<32x128xbf16>, vector<16x128xf32> -> vector<16x128xf32>
    %99 = arith.addf %79, %98 : vector<16x128xf32>
    %100 = vector.broadcast %9 : vector<1x128xf32> to vector<16x128xf32>
    %101 = arith.addf %99, %100 : vector<16x128xf32>
    %102 = arith.addf %101, %6 : vector<16x128xf32>
    %cst_36 = arith.constant dense<0.000000e+00> : vector<16xf32>
    %103 = vector.multi_reduction <add>, %102, %cst_36 [1] : vector<16x128xf32> to vector<16xf32>
    %104 = vector.shape_cast %103 : vector<16xf32> to vector<16x1xf32>
    %cst_37 = arith.constant 1.280000e+02 : f32
    %105 = vector.broadcast %cst_37 : f32 to vector<16x1xf32>
    %106 = arith.divf %104, %105 : vector<16x1xf32>
    %107 = vector.broadcast %106 : vector<16x1xf32> to vector<16x128xf32>
    %108 = arith.subf %102, %107 : vector<16x128xf32>
    %109 = arith.mulf %108, %108 : vector<16x128xf32>
    %cst_38 = arith.constant dense<0.000000e+00> : vector<16xf32>
    %110 = vector.multi_reduction <add>, %109, %cst_38 [1] : vector<16x128xf32> to vector<16xf32>
    %111 = vector.shape_cast %110 : vector<16xf32> to vector<16x1xf32>
    %cst_39 = arith.constant 1.280000e+02 : f32
    %112 = vector.broadcast %cst_39 : f32 to vector<16x1xf32>
    %113 = arith.divf %111, %112 : vector<16x1xf32>
    %114 = vector.broadcast %106 : vector<16x1xf32> to vector<16x128xf32>
    %115 = arith.subf %102, %114 : vector<16x128xf32>
    %cst_40 = arith.constant 9.99999974E-6 : f32
    %116 = vector.broadcast %cst_40 : f32 to vector<16x1xf32>
    %117 = arith.addf %113, %116 : vector<16x1xf32>
    %118 = math.rsqrt %117 : vector<16x1xf32>
    %119 = vector.broadcast %118 : vector<16x1xf32> to vector<16x128xf32>
    %120 = arith.mulf %115, %119 : vector<16x128xf32>
    %121 = vector.broadcast %10 : vector<1x128xf32> to vector<16x128xf32>
    %122 = arith.mulf %120, %121 : vector<16x128xf32>
    %123 = vector.broadcast %11 : vector<1x128xf32> to vector<16x128xf32>
    %124 = arith.addf %122, %123 : vector<16x128xf32>
    %c0_41 = arith.constant 0 : index
    %c0_42 = arith.constant 0 : index
    %c0_43 = arith.constant 0 : index
    %125 = vector.load %arg8[%c0_41, %c0_42, %c0_43] : memref<1x16x128xf32, #tpu.memory_space<vmem>>, vector<1x16x128xf32>
    %126 = vector.shape_cast %125 : vector<1x16x128xf32> to vector<16x128xf32>
    %127 = vector.shape_cast %124 : vector<16x128xf32> to vector<1x16x128xf32>
    tpu.vector_store %arg8[%c0_41, %c0_42, %c0_43], %127 {strides = array<i32>} : memref<1x16x128xf32, #tpu.memory_space<vmem>>, vector<1x16x128xf32>,
    return
  }
  func.func @transform_0(%arg0: i32, %arg1: i32) -> (i32, i32, i32) {
    %c0_i32 = arith.constant 0 : i32
    %c0_i32_0 = arith.constant 0 : i32
    %c0_i32_1 = arith.constant 0 : i32
    return %arg0, %c0_i32, %c0_i32_0 : i32, i32, i32
  }
  func.func @transform_1(%arg0: i32, %arg1: i32) -> (i32, i32) {
    %c0_i32 = arith.constant 0 : i32
    %c0_i32_0 = arith.constant 0 : i32
    return %arg1, %c0_i32 : i32, i32
  }
  func.func @transform_2(%arg0: i32, %arg1: i32) -> (i32, i32) {
    %c0_i32 = arith.constant 0 : i32
    %c0_i32_0 = arith.constant 0 : i32
    %c0_i32_1 = arith.constant 0 : i32
    return %c0_i32, %c0_i32_0 : i32, i32
  }
  func.func @transform_3(%arg0: i32, %arg1: i32) -> (i32, i32) {
    %c0_i32 = arith.constant 0 : i32
    %c0_i32_0 = arith.constant 0 : i32
    %c0_i32_1 = arith.constant 0 : i32
    return %c0_i32, %c0_i32_0 : i32, i32
  }
  func.func @transform_4(%arg0: i32, %arg1: i32) -> (i32, i32) {
    %c0_i32 = arith.constant 0 : i32
    %c0_i32_0 = arith.constant 0 : i32
    %c0_i32_1 = arith.constant 0 : i32
    return %c0_i32, %c0_i32_0 : i32, i32
  }
  func.func @transform_5(%arg0: i32, %arg1: i32) -> (i32, i32) {
    %c0_i32 = arith.constant 0 : i32
    %c0_i32_0 = arith.constant 0 : i32
    %c0_i32_1 = arith.constant 0 : i32
    return %c0_i32, %c0_i32_0 : i32, i32
  }
  func.func @transform_6(%arg0: i32, %arg1: i32) -> (i32, i32, i32) {
    %c0_i32 = arith.constant 0 : i32
    %c0_i32_0 = arith.constant 0 : i32
    return %arg0, %arg1, %c0_i32 : i32, i32, i32
  }
}

</mosaic_0001>

<bundles_post_ra>
// kernel: tpu_custom_call.1
= control target key start
LH: loop header
LB: loop body
LE: loop exit
PB: predicated region body
PF: predicated region fallthrough
CT: control target
= control target key end

     0   :  { %s2013_s0 = inlined_call_operand.hbm [shape: f32[2,16,128], index: 0, kind: input, shape index: {}]   ;;  %s2014_s1 = inlined_call_operand.hbm [shape: f32[16,16], index: 1, kind: input, shape index: {}]   ;;  %s2015_s2 = inlined_call_operand.hbm [shape: f32[128,128], index: 2, kind: input, shape index: {}]   ;;  %s2016_s3 = inlined_call_operand.vmem [shape: f32[1,128], index: 3, kind: input, shape index: {}]   ;;  %s2017_s4 = inlined_call_operand.vmem [shape: f32[1,128], index: 4, kind: input, shape index: {}]   ;;  %s2018_s5 = inlined_call_operand.vmem [shape: f32[1,128], index: 5, kind: input, shape index: {}]   ;;  %s2019_s6 = inlined_call_operand.hbm [shape: f32[2,16,128], index: 6, kind: output, shape index: {}]  }
   0x1   :  { %2022 = sst [smem:[#allocation12_spill]] %s2014_s1 }
   0x2   :  { %2023 = sst [smem:[#allocation13_spill]] %s2015_s2 }
   0x3   :  { %11 = vsyncpa [#allocation3], 0 }
   0x4   :  { %13 = vsyncpa [#allocation3 + $0x1], 0 }
   0x5   :  { %14 = vsyncpa [#allocation6], 0 }
   0x6   :  { %15 = vsyncpa [#allocation4], 0 }
   0x7   :  { %17 = vsyncpa [#allocation4 + $0x1], 0  ;;  %s1684_s21 = smov 0   ;;  %s1686_s22 = smov 0  }
   0x8   :  { %s1688_s23 = smov 0   ;;  %s1690_s24 = smov 0  }
   0x9   :  { %s1692_s25 = smov 0   ;;  %s1694_s26 = smov 0  }
   0xa LB: > { %s1198_s27 = sadd.s32 4294967295, %s1634_s26   ;;  %s1199_s28 = sadd.s32 4294967294, %s1634_s26   ;;  %s1634_s26 = sphi %s1694_s26, %s23_s26   ;;  %s1630_s25 = sphi %s1692_s25, %s2042_s25   ;;  %s1626_s24 = sphi %s1690_s24, %s2041_s24   ;;  %s1622_s23 = sphi %s1688_s23, %s2040_s23   ;;  %s1618_s22 = sphi %s1686_s22, %s2039_s22   ;;  %s1614_s21 = sphi %s1684_s21, %s2038_s21  }
   0xb   : > { %p55_p0 = scmp.ne.s32.totalorder %s1618_s22, %s1614_s21  ;;  %p1718_p1 = scmp.eq.s32.totalorder %s1198_s27, 0 }
   0xc   : > { %p1722_p2 = scmp.eq.s32.totalorder %s1198_s27, 1  ;;  %p197_p3 = scmp.eq.s32.totalorder %s1199_s28, 1 }
   0xd   : > { %p1728_p4 = por %p1718_p1, %p55_p0  ;;  %p1200_p5 = scmp.ge.s32.totalorder %s1634_s26, 1 }
   0xe   : > { %p1733_p6 = por %p197_p3, %p55_p0  ;;  %p204_p7 = scmp.lt.s32.totalorder %s1634_s26, 3 }
   0xf   : > { %s1636_s10 = smov [#allocation5]   ;;  %s1637_s13 = smov [#allocation7]  }
  0x10   : > { %s2027_s8 = scalar_select %p1733_p6, 1, 0 }
  0x11   : > { %p1738_p8 = pnand %p1200_p5, %p204_p7  ;;  %s219_s11 = sshll.u32 %s1636_s10, 4  ;;  %s220_s11 = int_to_ptr.vmem [resolvable:$true] %s219_s11 }
  0x12   : > { %s232_s14 = sshll.u32 %s1637_s13, 4  ;;  %s1481_s15 = scalar_lea.vmem %s220_s11, 256  ;;  %s233_s14 = int_to_ptr.vmem [resolvable:$true] %s232_s14 }
  0x13   : > { %p1354_p9 = pneg %p1738_p8  ;;  %p1482_p13 = scmp.ne.s32.totalorder %s220_s11, %s1481_s15 }
  0x14   : > { %p1489_p5 = scmp.lt.s32.totalorder %s220_s11, %s220_s11  ;;  %p1490_p7 = scmp.lt.s32.totalorder %s1481_s15, %s1481_s15 }
  0x15   : > { %p1747_p11 = pnand %p1354_p9, %p1718_p1 }
  0x16   : > { %p1491_p10 = por %p1490_p7, %p1489_p5 }
  0x17   : > { %p1472_p12 = pneg %p1747_p11 }
  0x19   : > { %p1484_p0 = pnand %p1482_p13, %p1472_p12 }
  0x1b   : > { %p1485_p3 = pneg %p1484_p0 }
  0x1d   : > { %p1492_p9 = pnand %p1491_p10, %p1485_p3 }
  0x1f   : > { %1495 = shalt.err (!%p1492_p9)
}
  0x20   : > { %s2020_s16 = smov 128   ;;  %s2021_s17 = smov 8  }
  0x21   : > { %s2030_s1 = sld [smem:[#allocation12_spill]]  ;;  %s1507_s20 = scalar_lea.vmem %s233_s14, 2048 }
  0x22   : > { %p1508_p13 = scmp.ne.s32.totalorder %s233_s14, %s1507_s20  ;;  %p1515_p10 = scmp.lt.s32.totalorder %s233_s14, %s233_s14 }
  0x23   : > { %p1516_p3 = scmp.lt.s32.totalorder %s1507_s20, %s1507_s20 }
  0x24   : > { %p1510_p0 = pnand %p1508_p13, %p1472_p12 }
  0x25   : > { %p1517_p7 = por %p1516_p3, %p1515_p10 }
  0x26   : > { %p1511_p5 = pneg %p1510_p0 }
  0x27   : > { %1357 = dma.hbm_to_vmem [thread:$0]  (!%p1747_p11), %s2030_s1, 256, %s220_s11, [#allocation6], %s2020_s16, %s2020_s16, %s2021_s17  }
  0x28   : > { %p1518_p9 = pnand %p1517_p7, %p1511_p5 }
  0x2a   : > { %1521 = shalt.err (!%p1518_p9)
}
  0x2b   : > { %s2031_s2 = sld [smem:[#allocation13_spill]]  ;;  %s35_s10 = sadd.s32 1, %s1630_s25 }
  0x2c   : > { %s42_s11 = sadd.s32 1, %s1622_s23  ;;  %p37_p12 = scmp.ge.s32.totalorder %s35_s10, 2 }
  0x2d   : > { %p49_p13 = scmp.ne.s32.totalorder %s1622_s23, %s1618_s22  ;;  %p50_p0 = scmp.eq.s32.totalorder %s1634_s26, 0 }
  0x2e   : > { %p1371_p5 = scmp.lt.s32.totalorder %s1634_s26, 2  ;;  %s2044_s10 = smov (%p37_p12, %s35_s10), 0 }
  0x2f   : > { %p51_p10 = por %p50_p0, %p49_p13  ;;  %p1785_p3 = por %p1722_p2, %p49_p13 }
  0x30   : > { %s39_s13 = ssub.s32 %s1630_s25, %s2044_s10  ;;  %s255_s15 = sand.u32 1, %s1622_s23  }
  0x31   : > { %1360 = dma.hbm_to_vmem [thread:$0]  (!%p1747_p11), %s2031_s2, 2048, %s233_s14, [#allocation6], %s2020_s16, %s2020_s16, %s2021_s17  }
  0x32   : > { %p40_p7 = scmp.eq.s32.totalorder %s39_s13, 0  ;;  %s1204_s14 = sshll.u32 %s255_s15, 4 }
  0x33   : > { %s1232_s18 = sshll.u32 %s1630_s25, 8  ;;  %s259_s16 = scalar_lea.vmem [#allocation2], %s1204_s14 }
  0x34   : > { %s1794_s19 = scalar_select %p40_p7, %s1622_s23, %s42_s11  }
  0x35   : > { %s265_s28 = scalar_lea.hbm %s2013_s0, %s1232_s18  ;;  %s266_s17 = sshll.u32 %s259_s16, 4  ;;  %s267_s17 = int_to_ptr.vmem [resolvable:$true] %s266_s17 }
  0x36   : > { %p1801_p11 = pnand %p1371_p5, %p51_p10  ;;  %s256_s1 = scalar_lea.sflag [#allocation3], %s255_s15 }
  0x37   : > { %s1535_s13 = scalar_lea.vmem %s267_s17, 256  ;;  %s1640_s11 = smov [#allocation2]  }
  0x38   : > { %p1524_p2 = pneg %p1801_p11  ;;  %p1536_p9 = scmp.ne.s32.totalorder %s267_s17, %s1535_s13 }
  0x39   : > { %s1540_s2 = sshll.u32 %s1640_s11, 4  ;;  %s1541_s2 = int_to_ptr.vmem [resolvable:$false] %s1540_s2 }
  0x3a   : > { %p1538_p12 = pnand %p1536_p9, %p1524_p2  ;;  %s1542_s18 = scalar_lea.vmem %s1541_s2, 512 }
  0x3b   : > { %p1543_p0 = scmp.lt.s32.totalorder %s267_s17, %s1541_s2  ;;  %p1544_p7 = scmp.lt.s32.totalorder %s1542_s18, %s1535_s13 }
  0x3c   : > { %p1539_p13 = pneg %p1538_p12 }
  0x3d   : > { %p1545_p6 = por %p1544_p7, %p1543_p0 }
  0x3f   : > { %p1546_p5 = pnand %p1545_p6, %p1539_p13 }
  0x41   : > { %1549 = shalt.err (!%p1546_p5)
}
  0x42   : > { %s2034_s16 = smov 8   ;;  %s2035_s14 = smov 128  }
  0x43   : > { %1364 = dma.hbm_to_vmem [thread:$0]  (!%p1801_p11), %s265_s28, 256, %s267_s17, %s256_s1, %s2035_s14, %s2035_s14, %s2034_s16  }
  0x44   : > { %278 = sbr.rel (%p1738_p8) target bundleno = 3084 (0xc0c), region = 44  ;;  %s1815_s15 = sand.u32 (!%p1738_p8), 1, %s1618_s22  }
  0x45   : > { %s1208_s2 = sshll.u32 (!%p1738_p8), %s1815_s15, 4  ;;  %s281_s20 = scalar_lea.sflag (!%p1738_p8), [#allocation3], %s1815_s15 }
  0x46   : > { %s284_s27 = scalar_lea.vmem (!%p1738_p8), [#allocation2], %s1208_s2 }
  0x49   : > { %1601 = dma.done.wait (%p1728_p4), %s281_s20, 256  }
  0x4a   : > { %1603 = vsyncadd (%p1728_p4), %s281_s20, 4294967040 }
  0x4b   : > { %1605 = dma.done.wait (%p1718_p1), [#allocation6], 2304  }
  0x4c   : > { %1607 = vsyncadd (%p1718_p1), [#allocation6], 4294964992  ;;  %v1641_v0 = vmov 0.0   ;;  %vm1642_vm0 = vmmov 0   ;;  %v1835_v1 = vld [vmem:[%s284_s27] sm:$0xff]  ;;  %v1837_v2 = vld [vmem:[%s284_s27 + $0x8] sm:$0xff] }
  0x4d   : > { %1262 = vmatprep.subr.bf16.mxu0 %v1641_v0  ;;  %1264 = vmatprep.mubr.msk.bf16.mxu0 %vm1642_vm0, %v1641_v0  ;;  %vm365_vm1 = vcmask 261120   ;;  %v1841_v3 = vpack.c.bf16 %v1837_v2, %v1835_v1  ;;  %v353_v5 = vmul.f32 0.17677669, %v1835_v1  ;;  %v354_v6 = vmul.f32 0.17677669, %v1837_v2  ;;  %v330_v8 = vld [vmem:[#allocation5] sm:$0xff] }
  0x4e   : > { %1268 = vmatprep.subr.bf16.mxu1 %v1641_v0  ;;  %1270 = vmatprep.mubr.msk.bf16.mxu1 %vm1642_vm0, %v1641_v0  ;;  %v1856_v9 = vmul.f32 -1e-09, %v330_v8  ;;  %v331_v10 = vld [vmem:[#allocation5 + $0x8] sm:$0xff]  ;;  %vm413_vm2 = vcmask 130048   ;;  %s1643_s1 = smov 96   ;;  %v338_v63 = vld [vmem:[#allocation7 + $0x30] sm:$0xff] }
  0x4f   : > { %v370_v4 = vsel %vm365_vm1, %v1841_v3, 0  ;;  %1269 = vmatpush3.bf16.msra.mxu1 %v1841_v3  ;;  %v1850_v7 = vpack.c.bf16 %v354_v6, %v353_v5  ;;  %v1859_v13 = vmul.f32 -1e-09, %v331_v10  ;;  %s1644_s29 = smov 64   ;;  %s1645_s7 = smov 32  }
  0x50   : > { %1263 = vmatpush3.bf16.xpose.msra.mxu0 %v370_v4  ;;  %1274 = vmatprep.subr.bf16.mxu1 %v1641_v0  ;;  %v339_v4 = vld [vmem:[#allocation7 + $0x38] sm:$0xff]  ;;  %s1233_s18 = sshll.u32 %s1626_s24, 8  ;;  %s320_s16 = scalar_lea.vmem [#allocation8], %s1208_s2 }
  0x51   : > { %1280 = vmatprep.subr.bf16.mxu0 %v1641_v0  ;;  %v360_v5 = vpack.c.bf16 %v339_v4, %v338_v63  ;;  %s1091_s14 = sshll.u32 %s320_s16, 4  ;;  %s1646_s24 = smov [#allocation8]   ;;  %s1965_s14 = int_to_ptr.vmem [resolvable:$true] %s1091_s14 }
  0x52   : > { %s1554_s2 = sshll.u32 %s1646_s24, 4  ;;  %s1555_s2 = int_to_ptr.vmem [resolvable:$false] %s1554_s2 }
  0x53   : > { %s1556_s9 = scalar_lea.vmem %s1555_s2, 512  ;;  %p1557_p8 = scmp.lt.s32.totalorder %s1965_s14, %s1555_s2 }
  0x57   : > { %1265 = vmatmul.mubr.msk.bf16.vlgmr.msra.gmra.mxu0 %vm365_vm1, %v1850_v7 }
  0x58   : > { %1282 = vmatprep.mubr.msk.bf16.mxu0 %vm1642_vm0, %v1641_v0 }
 0x117   : > { %v406_v11 = vpop.f32.mrf.mxu0 }
 0x118   : > { %v407_v12 = vadd.f32 %v406_v11, %v1856_v9  ;;  %v334_v11 = vld [vmem:[#allocation7 + $0x10] sm:$0xff] }
 0x119   : > { %v1266_v14 = vpop.f32.mrf.mxu0 }
 0x11a   : > { %v414_v15 = vsel %vm413_vm2, %v407_v12, -inf }
 0x11b   : > { %415 = vmax.xlane.f32.xlu0 %v414_v15  ;;  %v409_v16 = vpop.f32.mrf.mxu0 }
 0x11c   : > { %v410_v17 = vadd.f32 %v409_v16, %v1859_v13 }
 0x11d   : > { %v1267_v18 = vpop.f32.mrf.mxu0 }
 0x11e   : > { %v417_v19 = vsel %vm413_vm2, %v410_v17, -inf }
 0x11f   : > { %418 = vmax.xlane.f32.xlu0 %v417_v19  ;;  %v332_v19 = vld [vmem:[#allocation7] sm:$0xff] }
 0x135   : > { %486 = vrot.lane.b32.xlu0 %v1841_v3, %s1643_s1 }
 0x1a4   : > { %v416_v20 = vpop.xlane.xlu0 %415 }
 0x1a5   : > { %v420_v21 = vsub.f32 %v407_v12, %v416_v20  ;;  %v335_v12 = vld [vmem:[#allocation7 + $0x18] sm:$0xff]  ;;  %v333_v20 = vld [vmem:[#allocation7 + $0x8] sm:$0xff] }
 0x1a7   : > { %v422_v22 = vmul.f32 1.442695, %v420_v21  ;;  %v357_v21 = vpack.c.bf16 %v333_v20, %v332_v19 }
 0x1a8   : > { %v419_v23 = vpop.xlane.xlu0 %418 }
 0x1a9   : > { %1434 = vpow2.f32 %v422_v22  ;;  %v421_v24 = vsub.f32 %v410_v17, %v419_v23  ;;  %v358_v17 = vpack.c.bf16 %v335_v12, %v334_v11  ;;  %v336_v22 = vld [vmem:[#allocation7 + $0x20] sm:$0xff]  ;;  %v337_v23 = vld [vmem:[#allocation7 + $0x28] sm:$0xff] }
 0x1aa   : > { %v340_v12 = vld [vmem:[#allocation7 + $0x40] sm:$0xff] }
 0x1ab   : > { %v424_v25 = vmul.f32 1.442695, %v421_v24  ;;  %v359_v24 = vpack.c.bf16 %v337_v23, %v336_v22 }
 0x1ac   : > { %v487_v30 = vpop.permute.xlu0 %486 }
 0x1ad   : > { %1436 = vpow2.f32 %v424_v25  ;;  %1281 = vmatpush3.bf16.msra.mxu0 %v487_v30  ;;  %v492_v37 = vsel %vm365_vm1, %v487_v30, 0 }
 0x1ae   : > { %1294 = vmatprep.subr.bf16.mxu0 %v1641_v0 }
 0x1b6   : > { %v1435_v26 = vpop.eup %1434 }
 0x1b7   : > { %v426_v27 = vsel %vm413_vm2, %v1435_v26, 0.0 }
 0x1b8   : > { %427 = vadd.xlane.f32.xlu1 %v426_v27 }
 0x1ba   : > { %v1437_v28 = vpop.eup %1436 }
 0x1bb   : > { %v429_v29 = vsel %vm413_vm2, %v1437_v28, 0.0 }
 0x1bc   : > { %430 = vadd.xlane.f32.xlu1 %v429_v29 }
 0x1cd   : > { %483 = vrot.lane.b32.xlu1 %v1850_v7, %s1643_s1  ;;  %s1963_s1 = scalar_lea.hbm %s2019_s6, %s1233_s18 }
 0x241   : > { %v428_v31 = vpop.xlane.xlu1 %427 }
 0x242   : > { %1438 = vrcp.f32 %v428_v31 }
 0x245   : > { %v431_v32 = vpop.xlane.xlu1 %430 }
 0x246   : > { %1440 = vrcp.f32 %v431_v32 }
 0x249   : > { %v484_v39 = vpop.permute.xlu1 %483 }
 0x24f   : > { %v1439_v33 = vpop.eup %1438 }
 0x250   : > { %v433_v35 = vmul.f32 %v1439_v33, %v1435_v26 }
 0x253   : > { %v1441_v34 = vpop.eup %1440 }
 0x254   : > { %v435_v36 = vmul.f32 %v1441_v34, %v1437_v28 }
 0x256   : > { %v436_v38 = vpack.c.bf16 %v435_v36, %v433_v35 }
 0x258   : > { %1271 = vmatmul.mubr.msk.bf16.vlgmr.msra.gmra.mxu1 %vm413_vm2, %v436_v38 }
 0x259   : > { %1275 = vmatpush3.bf16.xpose.msra.mxu1 %v492_v37  ;;  %1276 = vmatprep.mubr.msk.bf16.mxu1 %vm1642_vm0, %v1641_v0 }
 0x25a   : > { %1286 = vmatprep.subr.bf16.mxu1 %v1641_v0 }
 0x260   : > { %1277 = vmatmul.mubr.msk.bf16.vlgmr.msra.gmra.mxu1 %vm365_vm1, %v484_v39 }
 0x261   : > { %1290 = vmatprep.mubr.msk.bf16.mxu1 %vm1642_vm0, %v1641_v0  ;;  %1287 = vmatpush3.bf16.msra.mxu1 %v360_v5 }
 0x262   : > { %1288 = vmatprep.subr.bf16.mxu1 %v1641_v0 }
 0x265   : > { %1289 = vmatpush3.bf16.msra.mxu1 %v359_v24 }
 0x266   : > { %1302 = vmatprep.subr.bf16.mxu1 %v1641_v0 }
 0x318   : > { %v474_v40 = vpop.f32.mrf.mxu1 }
 0x31a   : > { %v1272_v41 = vpop.f32.mrf.mxu1 }
 0x31c   : > { %v477_v42 = vpop.f32.mrf.mxu1 }
 0x31d   : > { %v481_v43 = vpack.c.bf16 %v477_v42, %v474_v40 }
 0x31e   : > { %v1273_v44 = vpop.f32.mrf.mxu1 }
 0x320   : > { %v528_v45 = vpop.f32.mrf.mxu1 }
 0x321   : > { %v529_v46 = vadd.f32 %v528_v45, %v1856_v9 }
 0x322   : > { %v1278_v47 = vpop.f32.mrf.mxu1 }
 0x323   : > { %v535_v48 = vsel %vm413_vm2, %v529_v46, -inf }
 0x324   : > { %536 = vmax.xlane.f32.xlu1 %v535_v48  ;;  %v531_v49 = vpop.f32.mrf.mxu1 }
 0x325   : > { %v532_v50 = vadd.f32 %v531_v49, %v1859_v13 }
 0x326   : > { %v1279_v51 = vpop.f32.mrf.mxu1 }
 0x327   : > { %v538_v52 = vsel %vm413_vm2, %v532_v50, -inf }
 0x328   : > { %539 = vmax.xlane.f32.xlu0 %v538_v52 }
 0x3ad   : > { %v537_v53 = vpop.xlane.xlu1 %536 }
 0x3ae   : > { %v541_v54 = vsub.f32 %v529_v46, %v537_v53 }
 0x3b0   : > { %v543_v55 = vmul.f32 1.442695, %v541_v54 }
 0x3b1   : > { %v540_v56 = vpop.xlane.xlu0 %539 }
 0x3b2   : > { %1442 = vpow2.f32 %v543_v55  ;;  %v542_v57 = vsub.f32 %v532_v50, %v540_v56 }
 0x3b4   : > { %v545_v58 = vmul.f32 1.442695, %v542_v57 }
 0x3b6   : > { %1444 = vpow2.f32 %v545_v58 }
 0x3bf   : > { %v1443_v59 = vpop.eup %1442 }
 0x3c0   : > { %v547_v60 = vsel %vm413_vm2, %v1443_v59, 0.0 }
 0x3c1   : > { %548 = vadd.xlane.f32.xlu0 %v547_v60  ;;  %v343_v60 = vld [vmem:[#allocation7 + $0x58] sm:$0xff] }
 0x3c3   : > { %v1445_v61 = vpop.eup %1444 }
 0x3c4   : > { %v550_v62 = vsel %vm413_vm2, %v1445_v61, 0.0 }
 0x3c5   : > { %551 = vadd.xlane.f32.xlu1 %v550_v62 }
 0x3d6   : > { %692 = vrot.lane.b32.xlu1 %v1850_v7, %s1644_s29 }
 0x3d7   : > { %694 = vrot.lane.b32.xlu0 %v1841_v3, %s1644_s29  ;;  %s1076_s29 = scalar_lea.sflag [#allocation4], %s1815_s15 }
 0x44a   : > { %v549_v6 = vpop.xlane.xlu0 %548 }
 0x44b   : > { %1446 = vrcp.f32 %v549_v6 }
 0x44e   : > { %v552_v8 = vpop.xlane.xlu1 %551  ;;  %v695_v25 = vpop.permute.xlu0 %694 }
 0x44f   : > { %1448 = vrcp.f32 %v552_v8  ;;  %v700_v30 = vsel %vm365_vm1, %v695_v25, 0 }
 0x452   : > { %v693_v35 = vpop.permute.xlu1 %692 }
 0x458   : > { %v1447_v10 = vpop.eup %1446 }
 0x459   : > { %v554_v15 = vmul.f32 %v1447_v10, %v1443_v59  ;;  %v342_v59 = vld [vmem:[#allocation7 + $0x50] sm:$0xff] }
 0x45c   : > { %v1449_v14 = vpop.eup %1448 }
 0x45d   : > { %v556_v16 = vmul.f32 %v1449_v14, %v1445_v61  ;;  %v362_v61 = vpack.c.bf16 %v343_v60, %v342_v59  ;;  %v341_v14 = vld [vmem:[#allocation7 + $0x48] sm:$0xff] }
 0x45f   : > { %v557_v18 = vpack.c.bf16 %v556_v16, %v554_v15  ;;  %v361_v15 = vpack.c.bf16 %v341_v14, %v340_v12 }
 0x461   : > { %1283 = vmatmul.mubr.msk.bf16.vlgmr.msra.gmra.mxu0 %vm413_vm2, %v557_v18 }
 0x462   : > { %1295 = vmatpush3.bf16.msra.mxu0 %v358_v17  ;;  %1298 = vmatprep.mubr.msk.bf16.mxu0 %vm1642_vm0, %v1641_v0 }
 0x463   : > { %1296 = vmatprep.subr.bf16.mxu0 %v1641_v0 }
 0x466   : > { %1297 = vmatpush3.bf16.msra.mxu0 %v357_v21 }
 0x467   : > { %1308 = vmatprep.subr.bf16.mxu0 %v1641_v0 }
 0x469   : > { %1299 = vmatmul.mubr.msk.bf16.vlgmr.msra.gmra.mxu0 %vm365_vm1, %v481_v43 }
 0x46a   : > { %1310 = vmatprep.mubr.msk.bf16.mxu0 %vm1642_vm0, %v1641_v0  ;;  %1309 = vmatpush3.bf16.msra.mxu0 %v695_v25 }
 0x46b   : > { %1322 = vmatprep.subr.bf16.mxu0 %v1641_v0 }
 0x521   : > { %v596_v26 = vpop.f32.mrf.mxu0 }
 0x523   : > { %v1284_v27 = vpop.f32.mrf.mxu0 }
 0x525   : > { %v599_v28 = vpop.f32.mrf.mxu0 }
 0x526   : > { %v603_v29 = vpack.c.bf16 %v599_v28, %v596_v26 }
 0x527   : > { %v1285_v31 = vpop.f32.mrf.mxu0 }
 0x528   : > { %1291 = vmatmul.mubr.msk.bf16.vlgmr.msra.gmra.mxu1 %vm365_vm1, %v603_v29 }
 0x529   : > { %1303 = vmatpush3.bf16.xpose.msra.mxu1 %v700_v30  ;;  %v1898_v32 = vpop.f32.mrf.mxu0  ;;  %1304 = vmatprep.mubr.msk.bf16.mxu1 %vm1642_vm0, %v1641_v0 }
 0x52a   : > { %1314 = vmatprep.subr.bf16.mxu1 %v1641_v0 }
 0x52b   : > { %v1300_v33 = vpop.f32.mrf.mxu0 }
 0x52d   : > { %v1903_v34 = vpop.f32.mrf.mxu0 }
 0x52f   : > { %v1301_v36 = vpop.f32.mrf.mxu0 }
 0x530   : > { %1305 = vmatmul.mubr.msk.bf16.vlgmr.msra.gmra.mxu1 %vm365_vm1, %v693_v35 }
 0x531   : > { %1318 = vmatprep.mubr.msk.bf16.mxu1 %vm1642_vm0, %v1641_v0  ;;  %1315 = vmatpush3.bf16.msra.mxu1 %v362_v61 }
 0x532   : > { %1316 = vmatprep.subr.bf16.mxu1 %v1641_v0 }
 0x535   : > { %1317 = vmatpush3.bf16.msra.mxu1 %v361_v15 }
 0x536   : > { %1328 = vmatprep.subr.bf16.mxu1 %v1641_v0 }
 0x5e8   : > { %v1908_v37 = vpop.f32.mrf.mxu1 }
 0x5ea   : > { %v1292_v38 = vpop.f32.mrf.mxu1 }
 0x5ec   : > { %v1910_v39 = vpop.f32.mrf.mxu1 }
 0x5ee   : > { %v1293_v40 = vpop.f32.mrf.mxu1 }
 0x5f0   : > { %v736_v41 = vpop.f32.mrf.mxu1 }
 0x5f1   : > { %v737_v42 = vadd.f32 %v736_v41, %v1856_v9 }
 0x5f2   : > { %v1306_v43 = vpop.f32.mrf.mxu1 }
 0x5f3   : > { %v743_v44 = vsel %vm413_vm2, %v737_v42, -inf }
 0x5f4   : > { %744 = vmax.xlane.f32.xlu1 %v743_v44  ;;  %v739_v45 = vpop.f32.mrf.mxu1 }
 0x5f5   : > { %v740_v46 = vadd.f32 %v739_v45, %v1859_v13  ;;  %v346_v45 = vld [vmem:[#allocation7 + $0x70] sm:$0xff] }
 0x5f6   : > { %v1307_v47 = vpop.f32.mrf.mxu1 }
 0x5f7   : > { %v746_v48 = vsel %vm413_vm2, %v740_v46, -inf  ;;  %v689_v47 = vadd.f32 %v1903_v34, %v1910_v39  ;;  %v345_v34 = vld [vmem:[#allocation7 + $0x68] sm:$0xff] }
 0x5f8   : > { %747 = vmax.xlane.f32.xlu0 %v746_v48 }
 0x67d   : > { %v745_v49 = vpop.xlane.xlu1 %744 }
 0x67e   : > { %v749_v50 = vsub.f32 %v737_v42, %v745_v49 }
 0x680   : > { %v751_v51 = vmul.f32 1.442695, %v749_v50 }
 0x681   : > { %v748_v52 = vpop.xlane.xlu0 %747 }
 0x682   : > { %1450 = vpow2.f32 %v751_v51  ;;  %v750_v53 = vsub.f32 %v740_v46, %v748_v52  ;;  %v347_v46 = vld [vmem:[#allocation7 + $0x78] sm:$0xff] }
 0x683   : > { %v364_v48 = vpack.c.bf16 %v347_v46, %v346_v45 }
 0x684   : > { %v753_v54 = vmul.f32 1.442695, %v750_v53 }
 0x686   : > { %1452 = vpow2.f32 %v753_v54 }
 0x68f   : > { %v1451_v55 = vpop.eup %1450 }
 0x690   : > { %v755_v56 = vsel %vm413_vm2, %v1451_v55, 0.0 }
 0x691   : > { %756 = vadd.xlane.f32.xlu0 %v755_v56 }
 0x693   : > { %v1453_v57 = vpop.eup %1452 }
 0x694   : > { %v758_v58 = vsel %vm413_vm2, %v1453_v57, 0.0 }
 0x695   : > { %759 = vadd.xlane.f32.xlu1 %v758_v58 }
 0x6a6   : > { %858 = vrot.lane.b32.xlu1 %v1850_v7, %s1645_s7 }
 0x6a7   : > { %860 = vrot.lane.b32.xlu0 %v1841_v3, %s1645_s7  ;;  %s1550_s7 = scalar_lea.vmem %s1965_s14, 256 }
 0x6a8   : > { %p1551_p1 = scmp.ne.s32.totalorder %s1965_s14, %s1550_s7  ;;  %p1558_p10 = scmp.lt.s32.totalorder %s1556_s9, %s1550_s7 }
 0x6aa   : > { %p1552_p4 = pnand %p1551_p1, %p1785_p3  ;;  %p1559_p11 = por %p1558_p10, %p1557_p8 }
 0x6ac   : > { %p1553_p6 = pneg %p1552_p4 }
 0x6ae   : > { %p1560_p2 = pnand %p1559_p11, %p1553_p6 }
 0x71a   : > { %v757_v62 = vpop.xlane.xlu0 %756 }
 0x71b   : > { %1454 = vrcp.f32 %v757_v62  ;;  %v1224_v62 = vld [vmem:[%s2016_s3] ss:$0 sm:$0xff] }
 0x71e   : > { %v760_v63 = vpop.xlane.xlu1 %759  ;;  %v861_v6 = vpop.permute.xlu0 %860 }
 0x71f   : > { %1456 = vrcp.f32 %v760_v63  ;;  %v866_v11 = vsel %vm365_vm1, %v861_v6, 0 }
 0x722   : > { %v859_v3 = vpop.permute.xlu1 %858 }
 0x728   : > { %v1455_v4 = vpop.eup %1454 }
 0x729   : > { %v762_v8 = vmul.f32 %v1455_v4, %v1451_v55 }
 0x72c   : > { %v1457_v5 = vpop.eup %1456 }
 0x72d   : > { %v764_v10 = vmul.f32 %v1457_v5, %v1453_v57  ;;  %v344_v57 = vld [vmem:[#allocation7 + $0x60] sm:$0xff] }
 0x72e   : > { %v363_v39 = vpack.c.bf16 %v345_v34, %v344_v57 }
 0x72f   : > { %v765_v7 = vpack.c.bf16 %v764_v10, %v762_v8 }
 0x731   : > { %1311 = vmatmul.mubr.msk.bf16.vlgmr.msra.gmra.mxu0 %vm413_vm2, %v765_v7 }
 0x732   : > { %1323 = vmatpush3.bf16.xpose.msra.mxu0 %v866_v11  ;;  %1324 = vmatprep.mubr.msk.bf16.mxu0 %vm1642_vm0, %v1641_v0 }
 0x733   : > { %1334 = vmatprep.subr.bf16.mxu0 %v1641_v0 }
 0x739   : > { %1325 = vmatmul.mubr.msk.bf16.vlgmr.msra.gmra.mxu0 %vm365_vm1, %v859_v3 }
 0x73a   : > { %1338 = vmatprep.mubr.msk.bf16.mxu0 %vm1642_vm0, %v1641_v0  ;;  %1335 = vmatpush3.bf16.msra.mxu0 %v364_v48 }
 0x73b   : > { %1336 = vmatprep.subr.bf16.mxu0 %v1641_v0 }
 0x73e   : > { %1337 = vmatpush3.bf16.msra.mxu0 %v363_v39 }
 0x7f1   : > { %v804_v16 = vpop.f32.mrf.mxu0 }
 0x7f3   : > { %v1312_v17 = vpop.f32.mrf.mxu0 }
 0x7f5   : > { %v807_v18 = vpop.f32.mrf.mxu0 }
 0x7f6   : > { %v811_v19 = vpack.c.bf16 %v807_v18, %v804_v16 }
 0x7f7   : > { %v1313_v20 = vpop.f32.mrf.mxu0 }
 0x7f8   : > { %1319 = vmatmul.mubr.msk.bf16.vlgmr.msra.gmra.mxu1 %vm365_vm1, %v811_v19 }
 0x7f9   : > { %1329 = vmatpush3.bf16.msra.mxu1 %v861_v6  ;;  %v902_v21 = vpop.f32.mrf.mxu0  ;;  %1330 = vmatprep.mubr.msk.bf16.mxu1 %vm1642_vm0, %v1641_v0 }
 0x7fa   : > { %v903_v22 = vadd.f32 %v902_v21, %v1856_v9 }
 0x7fb   : > { %v1326_v23 = vpop.f32.mrf.mxu0 }
 0x7fc   : > { %v909_v24 = vsel %vm413_vm2, %v903_v22, -inf }
 0x7fd   : > { %910 = vmax.xlane.f32.xlu1 %v909_v24  ;;  %v905_v25 = vpop.f32.mrf.mxu0 }
 0x7fe   : > { %v906_v26 = vadd.f32 %v905_v25, %v1859_v13  ;;  %v686_v13 = vadd.f32 %v1898_v32, %v1908_v37 }
 0x7ff   : > { %v1327_v27 = vpop.f32.mrf.mxu0 }
 0x800   : > { %v912_v28 = vsel %vm413_vm2, %v906_v26, -inf  ;;  %v1225_v27 = vld [vmem:[%s2017_s4] ss:$0 sm:$0xff] }
 0x801   : > { %913 = vmax.xlane.f32.xlu0 %v912_v28 }
 0x886   : > { %v911_v29 = vpop.xlane.xlu1 %910 }
 0x887   : > { %v915_v30 = vsub.f32 %v903_v22, %v911_v29  ;;  %v1226_v29 = vld [vmem:[%s2018_s5] ss:$0 sm:$0xff] }
 0x889   : > { %v917_v31 = vmul.f32 1.442695, %v915_v30 }
 0x88a   : > { %v914_v33 = vpop.xlane.xlu0 %913 }
 0x88b   : > { %1458 = vpow2.f32 %v917_v31  ;;  %v916_v35 = vsub.f32 %v906_v26, %v914_v33 }
 0x88d   : > { %v919_v36 = vmul.f32 1.442695, %v916_v35 }
 0x88f   : > { %1460 = vpow2.f32 %v919_v36 }
 0x898   : > { %v1459_v9 = vpop.eup %1458 }
 0x899   : > { %v921_v38 = vsel %vm413_vm2, %v1459_v9, 0.0 }
 0x89a   : > { %922 = vadd.xlane.f32.xlu0 %v921_v38 }
 0x89c   : > { %v1461_v40 = vpop.eup %1460 }
 0x89d   : > { %v924_v41 = vsel %vm413_vm2, %v1461_v40, 0.0 }
 0x89e   : > { %925 = vadd.xlane.f32.xlu1 %v924_v41 }
 0x8b8   : > { %v849_v42 = vpop.f32.mrf.mxu1 }
 0x8b9   : > { %v856_v43 = vadd.f32 %v849_v42, %v686_v13 }
 0x8ba   : > { %v1320_v44 = vpop.f32.mrf.mxu1 }
 0x8bc   : > { %v852_v49 = vpop.f32.mrf.mxu1 }
 0x8bd   : > { %v857_v50 = vadd.f32 %v852_v49, %v689_v47 }
 0x8be   : > { %v1321_v51 = vpop.f32.mrf.mxu1 }
 0x923   : > { %v923_v52 = vpop.xlane.xlu0 %922 }
 0x924   : > { %1462 = vrcp.f32 %v923_v52 }
 0x927   : > { %v926_v53 = vpop.xlane.xlu1 %925 }
 0x928   : > { %1464 = vrcp.f32 %v926_v53 }
 0x931   : > { %v1463_v32 = vpop.eup %1462 }
 0x932   : > { %v928_v54 = vmul.f32 %v1463_v32, %v1459_v9 }
 0x935   : > { %v1465_v37 = vpop.eup %1464 }
 0x936   : > { %v930_v55 = vmul.f32 %v1465_v37, %v1461_v40 }
 0x938   : > { %v931_v56 = vpack.c.bf16 %v930_v55, %v928_v54 }
 0x93a   : > { %1331 = vmatmul.mubr.msk.bf16.vlgmr.msra.gmra.mxu1 %vm413_vm2, %v931_v56 }
 0x9fa   : > { %v970_v58 = vpop.f32.mrf.mxu1 }
 0x9fc   : > { %v1332_v59 = vpop.f32.mrf.mxu1 }
 0x9fe   : > { %v973_v60 = vpop.f32.mrf.mxu1 }
 0x9ff   : > { %v977_v61 = vpack.c.bf16 %v973_v60, %v970_v58 }
 0xa00   : > { %v1333_v0 = vpop.f32.mrf.mxu1 }
 0xa01   : > { %1339 = vmatmul.mubr.msk.bf16.vlgmr.msra.gmra.mxu0 %vm365_vm1, %v977_v61 }
 0xac1   : > { %v1015_v63 = vpop.f32.mrf.mxu0 }
 0xac2   : > { %v1022_v4 = vadd.f32 %v1015_v63, %v856_v43 }
 0xac3   : > { %v1340_v5 = vpop.f32.mrf.mxu0 }
 0xac4   : > { %v1030_v6 = vadd.f32 %v1224_v62, %v1022_v4 }
 0xac5   : > { %v1018_v8 = vpop.f32.mrf.mxu0 }
 0xac6   : > { %v1023_v10 = vadd.f32 %v1018_v8, %v857_v50  ;;  %v1032_v11 = vadd.f32 %v1030_v6, %v1835_v1 }
 0xac7   : > { %v1341_v7 = vpop.f32.mrf.mxu0 }
 0xac8   : > { %v1031_v3 = vadd.f32 %v1224_v62, %v1023_v10  ;;  %1034 = vadd.xlane.f32.xlu0 %v1032_v11 }
 0xaca   : > { %v1033_v12 = vadd.f32 %v1031_v3, %v1837_v2 }
 0xacc   : > { %1036 = vadd.xlane.f32.xlu1 %v1033_v12 }
 0xb51   : > { %v1035_v14 = vpop.xlane.xlu0 %1034 }
 0xb52   : > { %v1039_v15 = vmul.f32 0.0078125, %v1035_v14 }
 0xb54   : > { %v1041_v16 = vsub.f32 %v1032_v11, %v1039_v15 }
 0xb55   : > { %v1037_v17 = vpop.xlane.xlu1 %1036 }
 0xb56   : > { %v1040_v18 = vmul.f32 0.0078125, %v1037_v17  ;;  %v1043_v19 = vmul.f32 %v1041_v16, %v1041_v16 }
 0xb58   : > { %v1042_v20 = vsub.f32 %v1033_v12, %v1040_v18  ;;  %1045 = vadd.xlane.f32.xlu0 %v1043_v19 }
 0xb5a   : > { %v1044_v21 = vmul.f32 %v1042_v20, %v1042_v20 }
 0xb5c   : > { %1047 = vadd.xlane.f32.xlu1 %v1044_v21 }
 0xbe1   : > { %v1046_v22 = vpop.xlane.xlu0 %1045 }
 0xbe2   : > { %v1049_v23 = vmul.f32 0.0078125, %v1046_v22 }
 0xbe4   : > { %v1051_v1 = vadd.f32 1e-05, %v1049_v23 }
 0xbe5   : > { %v1048_v24 = vpop.xlane.xlu1 %1047 }
 0xbe6   : > { %1466 = vrsqrt.f32 %v1051_v1  ;;  %v1050_v25 = vmul.f32 0.0078125, %v1048_v24 }
 0xbe8   : > { %v1052_v2 = vadd.f32 1e-05, %v1050_v25 }
 0xbea   : > { %1468 = vrsqrt.f32 %v1052_v2 }
 0xbf3   : > { %v1467_v26 = vpop.eup %1466 }
 0xbf4   : > { %v1055_v28 = vmul.f32 %v1467_v26, %v1041_v16 }
 0xbf6   : > { %v1063_v30 = vmul.f32 %v1225_v27, %v1055_v28 }
 0xbf7   : > { %v1469_v31 = vpop.eup %1468 }
 0xbf8   : > { %v1071_v33 = vadd.f32 %v1226_v29, %v1063_v30  ;;  %v1056_v35 = vmul.f32 %v1469_v31, %v1042_v20 }
 0xbfa   : > { %v1064_v36 = vmul.f32 %v1225_v27, %v1056_v35  ;;  %1073 = vst [vmem:[%s320_s16] sm:$0xff] %v1071_v33 }
 0xbfc   : > { %v1072_v9 = vadd.f32 %v1226_v29, %v1064_v36 }
 0xbfe   : > { %1074 = vst [vmem:[%s320_s16 + $0x8] sm:$0xff] %v1072_v9 }
 0xbff   : > { %1563 = shalt.err (!%p1560_p2)
}
 0xc00   : > { %s1564_s17 = scalar_lea.hbm %s1963_s1, 256  ;;  %s1568_s13 = scalar_lea.hbm %s2019_s6, 512 }
 0xc01   : > { %p1565_p9 = scmp.ne.s32.totalorder %s1963_s1, %s1564_s17  ;;  %p1569_p0 = scmp.lt.s32.totalorder %s1963_s1, %s2019_s6 }
 0xc02   : > { %p1570_p7 = scmp.lt.s32.totalorder %s1568_s13, %s1564_s17 }
 0xc03   : > { %p1566_p12 = pnand %p1565_p9, %p1785_p3 }
 0xc04   : > { %p1571_p5 = por %p1570_p7, %p1569_p0 }
 0xc05   : > { %p1567_p13 = pneg %p1566_p12 }
 0xc07   : > { %p1572_p1 = pnand %p1571_p5, %p1567_p13 }
 0xc09   : > { %1575 = shalt.err (!%p1572_p1)
}
 0xc0a   : > { %s1647_s16 = smov 128   ;;  %s1648_s20 = smov 8  }
 0xc0b   : > { %1352 = dma.vmem_to_hbm [thread:$0]  (%p1785_p3), %s1965_s14, 256, %s1963_s1, %s1076_s29, %s1647_s16, %s1647_s16, %s1648_s20  }
 0xc0c PF: > { %s1106_s27 = sand.u32 1, %s1614_s21   ;;  %p2036_p4 = scmp.ne.s32.totalorder %s2027_s8, 0 }
 0xc0d   : > { %p2037_p6 = scmp.ge.s32.totalorder %s1634_s26, 2  ;;  %s1107_s7 = scalar_lea.sflag [#allocation4], %s1106_s27 }
 0xc0f   : > { %p1366_p8 = pnand %p2037_p6, %p2036_p4 }
 0xc11   : > { %p1367_p10 = pneg %p1366_p8 }
 0xc13   : > { %1609 = dma.done.wait (%p1367_p10), %s1107_s7, 256  }
 0xc14   : > { %1611 = vsyncadd (%p1367_p10), %s1107_s7, 4294967040  ;;  %s23_s26 = sadd.s32 1, %s1634_s26   ;;  %s2038_s21 = smov %s1618_s22 }
 0xc15   : > { %p20_p11 = scmp.ge.s32.totalorder %s23_s26, 4   ;;  %s2039_s22 = smov %s1622_s23 }
 0xc16   : > { %s2040_s23 = smov %s1794_s19  ;;  %s2041_s24 = smov %s1630_s25 }
 0xc17   : > { %s2042_s25 = smov %s2044_s10  ;;  %22 = sbr.rel (!%p20_p11) target bundleno = 10 (0xa), region = 99 }
 0xc1c   :  { %1112 = vsyncpa [#allocation3], 1 }
 0xc1d   :  { %1114 = vsyncpa [#allocation3 + $0x1], 1 }
 0xc1e   :  { %1115 = vsyncpa [#allocation6], 1 }
 0xc1f   :  { %1116 = vsyncpa [#allocation4], 1 }
 0xc20   :  { %1118 = vsyncpa [#allocation4 + $0x1], 1 }

</bundles_post_ra>
